<compile_context>
chip_gen: v5e
topology: v5e:2x2
jax: 0.10.0
libtpu: 0.0.40
codegen_flags: <defaults>
</compile_context>

<pallas_src>
import functools

import jax
import jax.numpy as jnp
from jax.experimental import pallas as pl

_LANE = 128


def _feat_regressor_kernel(x_ref,
                           w1_ref, g1_ref, bt1_ref,
                           w2_ref, g2_ref, bt2_ref,
                           w3_ref, b3_ref,
                           o_ref):
    eps = jnp.float32(1e-5)
    inv_b = jnp.float32(1.0 / x_ref.shape[0])

    def linear_bn_relu(h_in, w_ref, g_ref, bt_ref):
        # Linear (pre-BN bias omitted: it cancels against train-mode BN's mean).
        h = jnp.dot(h_in, w_ref[...], preferred_element_type=jnp.float32)
        # BatchNorm1d, training mode (batch stats, biased variance), folded into a
        # per-feature scale/shift.  Single reduction pass over [B, D] (XLU reduce).
        s1 = jnp.sum(h, axis=0, keepdims=True)
        s2 = jnp.sum(h * h, axis=0, keepdims=True)
        mean = s1 * inv_b
        var = jnp.maximum(s2 * inv_b - mean * mean, 0.0)
        scale = g_ref[...] * jax.lax.rsqrt(var + eps)      # EUP rsqrt (free slot)
        shift = bt_ref[...] - mean * scale
        # Apply + ReLU (2 VPU ops/elem); cast to bf16 for the next MXU pass.
        return jnp.maximum(h * scale + shift, 0.0).astype(jnp.bfloat16)

    h = linear_bn_relu(x_ref[...].astype(jnp.bfloat16), w1_ref, g1_ref, bt1_ref)
    h = linear_bn_relu(h, w2_ref, g2_ref, bt2_ref)
    out = jnp.dot(h, w3_ref[...], preferred_element_type=jnp.float32) + b3_ref[...]
    o_ref[...] = out.astype(o_ref.dtype)                   # lane-dense (B, 128) store


@functools.partial(jax.jit, static_argnames=())
def feat_regressor_forward(x, params):
    """x: [B, input_dim] float32.  params: see init_params.  Returns [B, output_dim] f32."""
    B = x.shape[0]
    out_dim = params["w3"].shape[1]
    out_pad = pl.cdiv(out_dim, _LANE) * _LANE

    # Lane-dense output: zero-pad the last linear layer to a multiple of 128 lanes so
    # the final store is an unmasked full-lane vst; true columns sliced off below.
    w3p = jnp.pad(params["w3"], ((0, 0), (0, out_pad - out_dim)))
    b3p = jnp.pad(params["b3"], ((0, 0), (0, out_pad - out_dim)))

    # Single grid point: all activations stay VMEM-resident.  Fine for small/moderate B.
    # TODO(synk): for large B (esp. v7x's 64 MiB VMEM / 2 TCs), restructure as a
    # batch-tiled two-pass-BN pipeline (accumulate per-feature sum / sum-sq across a
    # batch grid axis, then apply scale/shift fused with the next matmul).
    hid_max = max(params["w1"].shape[1], params["w2"].shape[1], out_pad)
    assert B * hid_max * 4 * 6 < 24 << 20, "batch too large for the single-block kernel; tile B"

    args = (x,
            params["w1"], params["g1"], params["bt1"],
            params["w2"], params["g2"], params["bt2"],
            w3p, b3p)

    def full_spec(a):
        # Block == full array, so the (8, 128) divisibility constraint never triggers.
        return pl.BlockSpec(a.shape, lambda: (0,) * a.ndim)

    out = pl.pallas_call(
        _feat_regressor_kernel,
        out_shape=jax.ShapeDtypeStruct((B, out_pad), jnp.float32),
        grid=(),
        in_specs=[full_spec(a) for a in args],
        out_specs=pl.BlockSpec((B, out_pad), lambda: (0, 0)),
    )(*args)
    return out[:, :out_dim]


def init_params(key, input_dim, output_dim, hidden_dims=(256, 128)):
    """Mirror PyTorch Linear defaults (uniform +-1/sqrt(fan_in)); BN gamma=1, beta=0.
    Weights stored in bf16 (halves DMA, enables the MXU bf16 path); biases / BN params
    stay f32 and are kept 2D (1, dim) for TPU lane layout.  b1/b2 exist for module
    parity but are not consumed by the kernel (they cancel against train-mode BN)."""
    dims = [input_dim] + list(hidden_dims) + [output_dim]
    params = {}
    for i, (wn, bn) in enumerate([("w1", "b1"), ("w2", "b2"), ("w3", "b3")]):
        fan_in, fan_out = dims[i], dims[i + 1]
        key, kw, kb = jax.random.split(key, 3)
        bound = 1.0 / jnp.sqrt(jnp.float32(fan_in))
        params[wn] = jax.random.uniform(kw, (fan_in, fan_out), jnp.float32,
                                        -bound, bound).astype(jnp.bfloat16)
        params[bn] = jax.random.uniform(kb, (1, fan_out), jnp.float32, -bound, bound)
    params["g1"] = jnp.ones((1, hidden_dims[0]), jnp.float32)
    params["bt1"] = jnp.zeros((1, hidden_dims[0]), jnp.float32)
    params["g2"] = jnp.ones((1, hidden_dims[1]), jnp.float32)
    params["bt2"] = jnp.zeros((1, hidden_dims[1]), jnp.float32)
    return params


def _reference_forward(x, p):
    """Faithful f32 math on the stored weight values (biases included before BN)."""
    eps = 1e-5

    def block(h, w, b, g, bt):
        h = h @ w.astype(jnp.float32) + b
        m = h.mean(0, keepdims=True)
        v = ((h - m) ** 2).mean(0, keepdims=True)
        h = (h - m) / jnp.sqrt(v + eps) * g + bt
        return jnp.maximum(h, 0.0)

    h = block(x, p["w1"], p["b1"], p["g1"], p["bt1"])
    h = block(h, p["w2"], p["b2"], p["g2"], p["bt2"])
    return h @ p["w3"].astype(jnp.float32) + p["b3"]


if __name__ == "__main__":
    key = jax.random.PRNGKey(0)
    B, input_dim, output_dim = 8, 32, 16
    hidden_dims = (256, 128)

    key, kx, kp = jax.random.split(key, 3)
    x = jax.random.normal(kx, (B, input_dim), jnp.float32)
    params = init_params(kp, input_dim, output_dim, hidden_dims)

    out = feat_regressor_forward(x, params)
    out = jax.block_until_ready(out)

    ref = _reference_forward(x, params)
    assert out.shape == (B, output_dim)
    # bf16 matmul inputs (f32 accumulation) vs. the all-f32 reference introduce a few
    # e-3 of noise on O(1) outputs; 5e-2 tolerance is comfortably above that.
    assert jnp.allclose(out, ref, atol=5e-2, rtol=5e-2), "mismatch vs JAX reference"

    print("KERNEL_OK")
</pallas_src>

<mosaic_0001>
module attributes {stable_mosaic.version = 11 : i64} {
  func.func @_feat_regressor_kernel(%arg0: memref<8x32xf32, #tpu.memory_space<vmem>>, %arg1: memref<32x256xbf16, #tpu.memory_space<vmem>>, %arg2: memref<1x256xf32, #tpu.memory_space<vmem>>, %arg3: memref<1x256xf32, #tpu.memory_space<vmem>>, %arg4: memref<256x128xbf16, #tpu.memory_space<vmem>>, %arg5: memref<1x128xf32, #tpu.memory_space<vmem>>, %arg6: memref<1x128xf32, #tpu.memory_space<vmem>>, %arg7: memref<128x128xbf16, #tpu.memory_space<vmem>>, %arg8: memref<1x128xf32, #tpu.memory_space<vmem>>, %arg9: memref<8x128xf32, #tpu.memory_space<vmem>>) attributes {dimension_semantics = [], scalar_prefetch = 0 : i64, scratch_operands = 0 : i64, tpu.core_type = #tpu.core_type<tc>} {
    %c0 = arith.constant 0 : index
    %c0_0 = arith.constant 0 : index
    %0 = vector.load %arg0[%c0, %c0_0] : memref<8x32xf32, #tpu.memory_space<vmem>>, vector<8x32xf32>
    %1 = arith.truncf %0 : vector<8x32xf32> to vector<8x32xbf16>
    %c0_1 = arith.constant 0 : index
    %c0_2 = arith.constant 0 : index
    %2 = vector.load %arg1[%c0_1, %c0_2] : memref<32x256xbf16, #tpu.memory_space<vmem>>, vector<32x256xbf16>
    %cst = arith.constant dense<0.000000e+00> : vector<8x256xf32>
    %3 = tpu.matmul %1, %2, %cst {dimension_numbers = #tpu.dot_dimension_numbers<[1], [0], [0], [1], [0, 0, 1, 1], [], []>} : vector<8x32xbf16>, vector<32x256xbf16>, vector<8x256xf32> -> vector<8x256xf32>
    %cst_3 = arith.constant dense<0.000000e+00> : vector<256xf32>
    %4 = vector.multi_reduction <add>, %3, %cst_3 [0] : vector<8x256xf32> to vector<256xf32>
    %5 = vector.shape_cast %4 : vector<256xf32> to vector<1x256xf32>
    %6 = arith.mulf %3, %3 : vector<8x256xf32>
    %cst_4 = arith.constant dense<0.000000e+00> : vector<256xf32>
    %7 = vector.multi_reduction <add>, %6, %cst_4 [0] : vector<8x256xf32> to vector<256xf32>
    %8 = vector.shape_cast %7 : vector<256xf32> to vector<1x256xf32>
    %cst_5 = arith.constant 1.250000e-01 : f32
    %9 = vector.broadcast %cst_5 : f32 to vector<1x256xf32>
    %10 = arith.mulf %5, %9 : vector<1x256xf32>
    %cst_6 = arith.constant 1.250000e-01 : f32
    %11 = vector.broadcast %cst_6 : f32 to vector<1x256xf32>
    %12 = arith.mulf %8, %11 : vector<1x256xf32>
    %13 = arith.mulf %10, %10 : vector<1x256xf32>
    %14 = arith.subf %12, %13 : vector<1x256xf32>
    %cst_7 = arith.constant 0.000000e+00 : f32
    %15 = vector.broadcast %cst_7 : f32 to vector<1x256xf32>
    %16 = arith.maximumf %14, %15 : vector<1x256xf32>
    %c0_8 = arith.constant 0 : index
    %c0_9 = arith.constant 0 : index
    %17 = vector.load %arg2[%c0_8, %c0_9] : memref<1x256xf32, #tpu.memory_space<vmem>>, vector<1x256xf32>
    %cst_10 = arith.constant 9.99999974E-6 : f32
    %18 = vector.broadcast %cst_10 : f32 to vector<1x256xf32>
    %19 = arith.addf %16, %18 : vector<1x256xf32>
    %20 = math.rsqrt %19 : vector<1x256xf32>
    %21 = arith.mulf %17, %20 : vector<1x256xf32>
    %c0_11 = arith.constant 0 : index
    %c0_12 = arith.constant 0 : index
    %22 = vector.load %arg3[%c0_11, %c0_12] : memref<1x256xf32, #tpu.memory_space<vmem>>, vector<1x256xf32>
    %23 = arith.mulf %10, %21 : vector<1x256xf32>
    %24 = arith.subf %22, %23 : vector<1x256xf32>
    %25 = vector.broadcast %21 : vector<1x256xf32> to vector<8x256xf32>
    %26 = arith.mulf %3, %25 : vector<8x256xf32>
    %27 = vector.broadcast %24 : vector<1x256xf32> to vector<8x256xf32>
    %28 = arith.addf %26, %27 : vector<8x256xf32>
    %cst_13 = arith.constant 0.000000e+00 : f32
    %29 = vector.broadcast %cst_13 : f32 to vector<8x256xf32>
    %30 = arith.maximumf %28, %29 : vector<8x256xf32>
    %31 = arith.truncf %30 : vector<8x256xf32> to vector<8x256xbf16>
    %c0_14 = arith.constant 0 : index
    %c0_15 = arith.constant 0 : index
    %32 = vector.load %arg4[%c0_14, %c0_15] : memref<256x128xbf16, #tpu.memory_space<vmem>>, vector<256x128xbf16>
    %cst_16 = arith.constant dense<0.000000e+00> : vector<8x128xf32>
    %33 = tpu.matmul %31, %32, %cst_16 {dimension_numbers = #tpu.dot_dimension_numbers<[1], [0], [0], [1], [0, 0, 1, 1], [], []>} : vector<8x256xbf16>, vector<256x128xbf16>, vector<8x128xf32> -> vector<8x128xf32>
    %cst_17 = arith.constant dense<0.000000e+00> : vector<128xf32>
    %34 = vector.multi_reduction <add>, %33, %cst_17 [0] : vector<8x128xf32> to vector<128xf32>
    %35 = vector.shape_cast %34 : vector<128xf32> to vector<1x128xf32>
    %36 = arith.mulf %33, %33 : vector<8x128xf32>
    %cst_18 = arith.constant dense<0.000000e+00> : vector<128xf32>
    %37 = vector.multi_reduction <add>, %36, %cst_18 [0] : vector<8x128xf32> to vector<128xf32>
    %38 = vector.shape_cast %37 : vector<128xf32> to vector<1x128xf32>
    %cst_19 = arith.constant 1.250000e-01 : f32
    %39 = vector.broadcast %cst_19 : f32 to vector<1x128xf32>
    %40 = arith.mulf %35, %39 : vector<1x128xf32>
    %cst_20 = arith.constant 1.250000e-01 : f32
    %41 = vector.broadcast %cst_20 : f32 to vector<1x128xf32>
    %42 = arith.mulf %38, %41 : vector<1x128xf32>
    %43 = arith.mulf %40, %40 : vector<1x128xf32>
    %44 = arith.subf %42, %43 : vector<1x128xf32>
    %cst_21 = arith.constant 0.000000e+00 : f32
    %45 = vector.broadcast %cst_21 : f32 to vector<1x128xf32>
    %46 = arith.maximumf %44, %45 : vector<1x128xf32>
    %c0_22 = arith.constant 0 : index
    %c0_23 = arith.constant 0 : index
    %47 = vector.load %arg5[%c0_22, %c0_23] : memref<1x128xf32, #tpu.memory_space<vmem>>, vector<1x128xf32>
    %cst_24 = arith.constant 9.99999974E-6 : f32
    %48 = vector.broadcast %cst_24 : f32 to vector<1x128xf32>
    %49 = arith.addf %46, %48 : vector<1x128xf32>
    %50 = math.rsqrt %49 : vector<1x128xf32>
    %51 = arith.mulf %47, %50 : vector<1x128xf32>
    %c0_25 = arith.constant 0 : index
    %c0_26 = arith.constant 0 : index
    %52 = vector.load %arg6[%c0_25, %c0_26] : memref<1x128xf32, #tpu.memory_space<vmem>>, vector<1x128xf32>
    %53 = arith.mulf %40, %51 : vector<1x128xf32>
    %54 = arith.subf %52, %53 : vector<1x128xf32>
    %55 = vector.broadcast %51 : vector<1x128xf32> to vector<8x128xf32>
    %56 = arith.mulf %33, %55 : vector<8x128xf32>
    %57 = vector.broadcast %54 : vector<1x128xf32> to vector<8x128xf32>
    %58 = arith.addf %56, %57 : vector<8x128xf32>
    %cst_27 = arith.constant 0.000000e+00 : f32
    %59 = vector.broadcast %cst_27 : f32 to vector<8x128xf32>
    %60 = arith.maximumf %58, %59 : vector<8x128xf32>
    %61 = arith.truncf %60 : vector<8x128xf32> to vector<8x128xbf16>
    %c0_28 = arith.constant 0 : index
    %c0_29 = arith.constant 0 : index
    %62 = vector.load %arg7[%c0_28, %c0_29] : memref<128x128xbf16, #tpu.memory_space<vmem>>, vector<128x128xbf16>
    %cst_30 = arith.constant dense<0.000000e+00> : vector<8x128xf32>
    %63 = tpu.matmul %61, %62, %cst_30 {dimension_numbers = #tpu.dot_dimension_numbers<[1], [0], [0], [1], [0, 0, 1, 1], [], []>} : vector<8x128xbf16>, vector<128x128xbf16>, vector<8x128xf32> -> vector<8x128xf32>
    %c0_31 = arith.constant 0 : index
    %c0_32 = arith.constant 0 : index
    %64 = vector.load %arg8[%c0_31, %c0_32] : memref<1x128xf32, #tpu.memory_space<vmem>>, vector<1x128xf32>
    %65 = vector.broadcast %64 : vector<1x128xf32> to vector<8x128xf32>
    %66 = arith.addf %63, %65 : vector<8x128xf32>
    %c0_33 = arith.constant 0 : index
    %c0_34 = arith.constant 0 : index
    %67 = vector.load %arg9[%c0_33, %c0_34] : memref<8x128xf32, #tpu.memory_space<vmem>>, vector<8x128xf32>
    tpu.vector_store %arg9[%c0_33, %c0_34], %66 {strides = array<i32>} : memref<8x128xf32, #tpu.memory_space<vmem>>, vector<8x128xf32>,
    return
  }
}

</mosaic_0001>

<bundles_post_ra>
// kernel: feat_regressor_forward.1
= control target key start
LH: loop header
LB: loop body
LE: loop exit
PB: predicated region body
PF: predicated region fallthrough
CT: control target
= control target key end

     0   :  { %s842_s0 = inlined_call_operand.vmem [shape: f32[8,32], index: 0, kind: input, shape index: {}]   ;;  %s843_s1 = inlined_call_operand.vmem [shape: bf16[32,256], index: 1, kind: input, shape index: {}]   ;;  %s844_s2 = inlined_call_operand.vmem [shape: f32[1,256], index: 2, kind: input, shape index: {}]   ;;  %s845_s3 = inlined_call_operand.vmem [shape: f32[1,256], index: 3, kind: input, shape index: {}]   ;;  %s846_s4 = inlined_call_operand.vmem [shape: bf16[256,128], index: 4, kind: input, shape index: {}]   ;;  %s847_s5 = inlined_call_operand.vmem [shape: f32[1,128], index: 5, kind: input, shape index: {}]   ;;  %s848_s6 = inlined_call_operand.vmem [shape: f32[1,128], index: 6, kind: input, shape index: {}]   ;;  %s849_s7 = inlined_call_operand.vmem [shape: bf16[128,128], index: 7, kind: input, shape index: {}]   ;;  %s850_s8 = inlined_call_operand.vmem [shape: f32[1,128], index: 8, kind: input, shape index: {}]   ;;  %s851_s9 = inlined_call_operand.hbm [shape: f32[8,128], index: 9, kind: output, shape index: {}]  }
   0x1   :  { %v489_v0 = vld [vmem:[%s843_s1 + $0x10] sm:$0xf]  ;;  %v596_v1 = vld [vmem:[%s843_s1 + $0x14] sm:$0xf0]  ;;  %v481_v2 = vld [vmem:[%s843_s1] sm:$0xf] }
   0x2   :  { %v490_v3 = vor.u32 %v596_v1, %v489_v0  ;;  %v594_v4 = vld [vmem:[%s843_s1 + $0x4] sm:$0xf0]  ;;  %v595_v5 = vld [vmem:[%s843_s1 + $0x14] sm:$0xf]  ;;  %v491_v6 = vld [vmem:[%s843_s1 + $0x18] sm:$0xf0] }
   0x3   :  { %v482_v7 = vor.u32 %v594_v4, %v481_v2  ;;  %v34_v8 = vld [vmem:[%s842_s0] sm:$0xff] }
   0x4   :  { %70 = vmatpush.bf16.msra.mxu1 %v490_v3 }
   0x5   :  { %14 = vsyncpa [#allocation3], 0  ;;  %v494_v9 = vor.u32 %v595_v5, %v491_v6  ;;  %v593_v10 = vld [vmem:[%s843_s1 + $0x4] sm:$0xf]  ;;  %v483_v11 = vld [vmem:[%s843_s1 + $0x8] sm:$0xf0]  ;;  %v35_v12 = vpack.c.bf16 %v34_v8, %v34_v8 }
   0x6   :  { %vm60_vm0 = vcmask 261120   ;;  %v486_v13 = vor.u32 %v593_v10, %v483_v11  ;;  %v604_v30 = vld [vmem:[%s846_s4 + $0x38] sm:$0xff]  ;;  %v603_v35 = vld [vmem:[%s846_s4 + $0x30] sm:$0xff]  ;;  %v602_v42 = vld [vmem:[%s846_s4 + $0x28] sm:$0xff]  ;;  %vm152_vm6 = vcmask 1040384   ;;  %s655_s11 = smov [#allocation2]  }
   0x7   :  { %v612_v31 = vld [vmem:[%s846_s4 + $0x78] sm:$0xff]  ;;  %311 = vmatpush.bf16.msra.mxu2 %v604_v30  ;;  %v611_v36 = vld [vmem:[%s846_s4 + $0x70] sm:$0xff]  ;;  %v610_v43 = vld [vmem:[%s846_s4 + $0x68] sm:$0xff]  ;;  %s468_s12 = sshll.u32 %s655_s11, 4  ;;  %s470_s14 = sshll.u32 %s851_s9, 4  ;;  %s469_s12 = int_to_ptr.vmem [resolvable:$true] %s468_s12  ;;  %s471_s14 = int_to_ptr.hbm [resolvable:$true] %s470_s14 }
   0x8   :  { %71 = vmatpush.bf16.msra.mxu1 %v482_v7  ;;  %324 = vmatpush.bf16.msra.mxu3 %v612_v31  ;;  %v601_v50 = vld [vmem:[%s846_s4 + $0x20] sm:$0xff]  ;;  %v600_v57 = vld [vmem:[%s846_s4 + $0x18] sm:$0xff]  ;;  %v599_v63 = vld [vmem:[%s846_s4 + $0x10] sm:$0xff] }
   0x9   :  { %v609_v51 = vld [vmem:[%s846_s4 + $0x60] sm:$0xff]  ;;  %v608_v58 = vld [vmem:[%s846_s4 + $0x58] sm:$0xff]  ;;  %v607_v0 = vld [vmem:[%s846_s4 + $0x50] sm:$0xff] }
   0xa   :  { %v598_v4 = vld [vmem:[%s846_s4 + $0x8] sm:$0xff]  ;;  %v597_v8 = vld [vmem:[%s846_s4] sm:$0xff] }
   0xb   :  { %495 = vmatmul.msk.bf16.vlgmr.msra.gmra.mxu1 %vm60_vm0, %v35_v12  ;;  %312 = vmatpush.bf16.msra.mxu2 %v603_v35  ;;  %v606_v5 = vld [vmem:[%s846_s4 + $0x48] sm:$0xff]  ;;  %v156_v31 = vld [vmem:[%s845_s3] sm:$0x3] }
   0xc   :  { %83 = vmatpush.bf16.msrb.mxu1 %v494_v9  ;;  %325 = vmatpush.bf16.msra.mxu3 %v611_v36  ;;  %v605_v9 = vld [vmem:[%s846_s4 + $0x40] sm:$0xff] }
   0xf   :  { %313 = vmatpush.bf16.msra.mxu2 %v602_v42 }
  0x10   :  { %84 = vmatpush.bf16.msrb.mxu1 %v486_v13  ;;  %326 = vmatpush.bf16.msra.mxu3 %v610_v43 }
  0x13   :  { %314 = vmatpush.bf16.msra.mxu2 %v601_v50 }
  0x14   :  { %327 = vmatpush.bf16.msra.mxu3 %v609_v51 }
  0x17   :  { %315 = vmatpush.bf16.msra.mxu2 %v600_v57  ;;  %v614_v57 = vld [vmem:[%s849_s7 + $0x8] sm:$0xff] }
  0x18   :  { %328 = vmatpush.bf16.msra.mxu3 %v608_v58 }
  0x1b   :  { %496 = vmatmul.msk.bf16.vlgmr.msrb.gmra.mxu1 %vm60_vm0, %v35_v12  ;;  %316 = vmatpush.bf16.msra.mxu2 %v599_v63 }
  0x1c   :  { %329 = vmatpush.bf16.msra.mxu3 %v607_v0  ;;  %v613_v0 = vld [vmem:[%s849_s7] sm:$0xff] }
  0x1f   :  { %317 = vmatpush.bf16.msra.mxu2 %v598_v4 }
  0x20   :  { %330 = vmatpush.bf16.msra.mxu3 %v606_v5 }
  0x23   :  { %318 = vmatpush.bf16.msra.mxu2 %v597_v8 }
  0x24   :  { %331 = vmatpush.bf16.msra.mxu3 %v605_v9 }
  0x88   :  { %v733_v14 = vpop.f32.mrf.mxu1 }
  0x89   :  { %v90_v15 = vrot.slane %v733_v14, 4  ;;  %v102_v16 = vmul.f32 %v733_v14, %v733_v14 }
  0x8b   :  { %v91_v17 = vadd.f32 %v90_v15, %v733_v14  ;;  %v104_v18 = vrot.slane %v102_v16, 4 }
  0x8d   :  { %v92_v19 = vrot.slane %v91_v17, 2  ;;  %v105_v20 = vadd.f32 %v104_v18, %v102_v16 }
  0x8f   :  { %v93_v21 = vadd.f32 %v92_v19, %v91_v17  ;;  %v106_v22 = vrot.slane %v105_v20, 2 }
  0x90   :  { %v75_v23 = vpop.f32.mrf.mxu1 }
  0x91   :  { %v94_v24 = vrot.slane %v93_v21, 1  ;;  %v107_v25 = vadd.f32 %v106_v22, %v105_v20  ;;  %v126_v22 = vld [vmem:[%s844_s2] sm:$0x3] }
  0x93   :  { %v95_v26 = vadd.f32 %v94_v24, %v93_v21  ;;  %v108_v27 = vrot.slane %v107_v25, 1 }
  0x95   :  { %v109_v28 = vadd.f32 %v108_v27, %v107_v25  ;;  %v739_v29 = vmul.f32 0.125, %v95_v26 }
  0x97   :  { %v118_v32 = vmul.f32 0.125, %v109_v28  ;;  %v120_v33 = vmul.f32 %v739_v29, %v739_v29 }
  0x98   :  { %v749_v34 = vpop.f32.mrf.mxu1 }
  0x99   :  { %v122_v37 = vsub.f32 %v118_v32, %v120_v33  ;;  %v96_v38 = vrot.slane %v749_v34, 4  ;;  %v103_v39 = vmul.f32 %v749_v34, %v749_v34 }
  0x9b   :  { %v97_v40 = vadd.f32 %v96_v38, %v749_v34  ;;  %v110_v41 = vrot.slane %v103_v39, 4  ;;  %v124_v44 = vmax.f32 %v122_v37, 0.0 }
  0x9d   :  { %v98_v45 = vrot.slane %v97_v40, 2  ;;  %v111_v46 = vadd.f32 %v110_v41, %v103_v39  ;;  %v127_v52 = vadd.f32 1e-05, %v124_v44 }
  0x9f   :  { %v99_v47 = vadd.f32 %v98_v45, %v97_v40  ;;  %v112_v48 = vrot.slane %v111_v46, 2  ;;  %623 = vrsqrt.f32 %v127_v52  ;;  %vm135_vm5 = vweird.f32 %v127_v52 }
  0xa0   :  { %v88_v49 = vpop.f32.mrf.mxu1 }
  0xa1   :  { %v100_v53 = vrot.slane %v99_v47, 1  ;;  %v113_v54 = vadd.f32 %v112_v48, %v111_v46  ;;  %v616_v48 = vld [vmem:[%s849_s7 + $0x18] sm:$0xff] }
  0xa3   :  { %v101_v55 = vadd.f32 %v100_v53, %v99_v47  ;;  %v114_v56 = vrot.slane %v113_v54, 1  ;;  %v617_v47 = vld [vmem:[%s849_s7 + $0x20] sm:$0xff] }
  0xa5   :  { %v115_v59 = vadd.f32 %v114_v56, %v113_v54  ;;  %v117_v60 = vmul.f32 0.125, %v101_v55  ;;  %v624_v2 = vpop.eup %623 }
  0xa6   :  { %v130_v7 = vmul.f32 %v624_v2, %v127_v52  ;;  %vm136_vm2 = vweird.f32 %v624_v2  ;;  %v615_v52 = vld [vmem:[%s849_s7 + $0x10] sm:$0xff] }
  0xa7   :  { %v119_v61 = vmul.f32 0.125, %v115_v59  ;;  %v121_v62 = vmul.f32 %v117_v60, %v117_v60  ;;  %vm137_vm7 = vmor %vm135_vm5, %vm136_vm2 }
  0xa8   :  { %v131_v10 = vmul.f32 %v624_v2, %v130_v7 }
  0xa9   :  { %v123_v1 = vsub.f32 %v119_v61, %v121_v62 }
  0xaa   :  { %v132_v13 = vmul.f32 0.5, %v131_v10 }
  0xab   :  { %v125_v3 = vmax.f32 %v123_v1, 0.0 }
  0xac   :  { %v133_v16 = vsub.f32 1.5, %v132_v13 }
  0xad   :  { %v128_v6 = vadd.f32 1e-05, %v125_v3 }
  0xae   :  { %v134_v19 = vmul.f32 %v624_v2, %v133_v16 }
  0xaf   :  { %625 = vrsqrt.f32 %v128_v6  ;;  %vm145_vm3 = vweird.f32 %v128_v6 }
  0xb0   :  { %v138_v24 = vsel %vm137_vm7, %v624_v2, %v134_v19 }
  0xb5   :  { %v626_v11 = vpop.eup %625 }
  0xb6   :  { %v140_v12 = vmul.f32 %v626_v11, %v128_v6  ;;  %vm146_vm1 = vweird.f32 %v626_v11 }
  0xb7   :  { %vm147_vm4 = vmor %vm145_vm3, %vm146_vm1 }
  0xb8   :  { %v141_v15 = vmul.f32 %v626_v11, %v140_v12 }
  0xba   :  { %v142_v17 = vmul.f32 0.5, %v141_v15 }
  0xbc   :  { %v143_v18 = vsub.f32 1.5, %v142_v17 }
  0xbe   :  { %v144_v20 = vmul.f32 %v626_v11, %v143_v18  ;;  %v355_v18 = vld [vmem:[%s847_s5] sm:$0x1] }
  0xc0   :  { %v148_v21 = vsel %vm147_vm4, %v626_v11, %v144_v20 }
  0xc1   :  { %v151_v23 = vrot.slane %v148_v21, 7 }
  0xc3   :  { %v153_v25 = vsel %vm152_vm6, %v138_v24, %v151_v23 }
  0xc4   :  { %v155_v26 = vmul.f32 %v153_v25, %v126_v22  ;;  %v368_v22 = vld [vmem:[%s848_s6] sm:$0x1] }
  0xc6   :  { %v158_v27 = vperm.slane %v155_v26, 0  ;;  %v159_v28 = vperm.slane %v155_v26, 1 }
  0xc8   :  { %v163_v30 = vmul.f32 %v159_v28, %v117_v60  ;;  %v162_v32 = vmul.f32 %v158_v27, %v739_v29  ;;  %v170_v37 = vmul.f32 %v158_v27, %v733_v14  ;;  %v171_v39 = vmul.f32 %v159_v28, %v749_v34  ;;  %v620_v29 = vld [vmem:[%s849_s7 + $0x38] sm:$0xff]  ;;  %v619_v14 = vld [vmem:[%s849_s7 + $0x30] sm:$0xff]  ;;  %v618_v34 = vld [vmem:[%s849_s7 + $0x28] sm:$0xff] }
  0xc9   :  { %449 = vmatpush.bf16.msra.mxu0 %v620_v29 }
  0xca   :  { %v166_v33 = vrot.slane %v163_v30, 7 }
  0xcc   :  { %v167_v35 = vsel %vm152_vm6, %v162_v32, %v166_v33  ;;  %v622_v32 = vld [vmem:[%s850_s8] ss:$0 sm:$0xff] }
  0xcd   :  { %v169_v36 = vsub.f32 %v156_v31, %v167_v35  ;;  %450 = vmatpush.bf16.msra.mxu0 %v619_v14 }
  0xcf   :  { %v173_v38 = vperm.slane %v169_v36, 0  ;;  %v174_v40 = vperm.slane %v169_v36, 1 }
  0xd1   :  { %v177_v41 = vadd.f32 %v173_v38, %v170_v37  ;;  %v178_v42 = vadd.f32 %v174_v40, %v171_v39  ;;  %451 = vmatpush.bf16.msra.mxu0 %v618_v34 }
  0xd3   :  { %v179_v43 = vmax.f32 %v177_v41, 0.0  ;;  %v180_v44 = vmax.f32 %v178_v42, 0.0 }
  0xd5   :  { %v181_v45 = vpack.c.bf16 %v179_v43, %v179_v43  ;;  %v182_v46 = vpack.c.bf16 %v180_v44, %v180_v44  ;;  %452 = vmatpush.bf16.msra.mxu0 %v617_v47 }
  0xd7   :  { %319 = vmatmul.bf16.vlgmr.msra.gmra.mxu2 %v181_v45  ;;  %332 = vmatmul.bf16.vlgmr.msra.gmra.mxu3 %v182_v46 }
  0xd9   :  { %453 = vmatpush.bf16.msra.mxu0 %v616_v48 }
  0xdd   :  { %454 = vmatpush.bf16.msra.mxu0 %v615_v52 }
  0xe1   :  { %455 = vmatpush.bf16.msra.mxu0 %v614_v57 }
  0xe5   :  { %456 = vmatpush.bf16.msra.mxu0 %v613_v0 }
 0x15a   :  { %v320_v49 = vpop.f32.mrf.mxu2  ;;  %v333_v50 = vpop.f32.mrf.mxu3 }
 0x15b   :  { %v334_v51 = vadd.f32 %v333_v50, %v320_v49 }
 0x15d   :  { %v337_v53 = vrot.slane %v334_v51, 4  ;;  %v343_v54 = vmul.f32 %v334_v51, %v334_v51 }
 0x15f   :  { %v338_v55 = vadd.f32 %v337_v53, %v334_v51  ;;  %v344_v56 = vrot.slane %v343_v54, 4 }
 0x161   :  { %v339_v58 = vrot.slane %v338_v55, 2  ;;  %v345_v59 = vadd.f32 %v344_v56, %v343_v54 }
 0x162   :  { %v322_v60 = vpop.f32.mrf.mxu2  ;;  %v335_v61 = vpop.f32.mrf.mxu3 }
 0x163   :  { %v340_v62 = vadd.f32 %v339_v58, %v338_v55  ;;  %v346_v63 = vrot.slane %v345_v59, 2 }
 0x165   :  { %v347_v1 = vadd.f32 %v346_v63, %v345_v59  ;;  %v341_v2 = vrot.slane %v340_v62, 1 }
 0x167   :  { %v348_v3 = vrot.slane %v347_v1, 1  ;;  %v342_v4 = vadd.f32 %v341_v2, %v340_v62 }
 0x169   :  { %v349_v5 = vadd.f32 %v348_v3, %v347_v1  ;;  %v350_v6 = vmul.f32 0.125, %v342_v4 }
 0x16b   :  { %v351_v7 = vmul.f32 0.125, %v349_v5  ;;  %v352_v8 = vmul.f32 %v350_v6, %v350_v6 }
 0x16d   :  { %v353_v9 = vsub.f32 %v351_v7, %v352_v8 }
 0x16f   :  { %v354_v10 = vmax.f32 %v353_v9, 0.0 }
 0x171   :  { %v356_v11 = vadd.f32 1e-05, %v354_v10 }
 0x173   :  { %627 = vrsqrt.f32 %v356_v11  ;;  %vm363_vm9 = vweird.f32 %v356_v11 }
 0x179   :  { %v628_v12 = vpop.eup %627 }
 0x17a   :  { %v358_v13 = vmul.f32 %v628_v12, %v356_v11  ;;  %vm364_vm8 = vweird.f32 %v628_v12 }
 0x17b   :  { %vm365_vm10 = vmor %vm363_vm9, %vm364_vm8 }
 0x17c   :  { %v359_v15 = vmul.f32 %v628_v12, %v358_v13 }
 0x17e   :  { %v360_v16 = vmul.f32 0.5, %v359_v15 }
 0x180   :  { %v361_v17 = vsub.f32 1.5, %v360_v16 }
 0x182   :  { %v362_v19 = vmul.f32 %v628_v12, %v361_v17 }
 0x184   :  { %v366_v20 = vsel %vm365_vm10, %v628_v12, %v362_v19 }
 0x185   :  { %v367_v21 = vmul.f32 %v366_v20, %v355_v18 }
 0x187   :  { %v369_v23 = vmul.f32 %v367_v21, %v350_v6  ;;  %v372_v24 = vperm.slane %v367_v21, 0 }
 0x189   :  { %v370_v25 = vsub.f32 %v368_v22, %v369_v23  ;;  %v374_v26 = vmul.f32 %v372_v24, %v334_v51 }
 0x18b   :  { %v376_v27 = vperm.slane %v370_v25, 0 }
 0x18d   :  { %v378_v28 = vadd.f32 %v376_v27, %v374_v26 }
 0x18f   :  { %v379_v30 = vmax.f32 %v378_v28, 0.0 }
 0x191   :  { %v380_v31 = vpack.c.bf16 %v379_v30, %v379_v30 }
 0x193   :  { %457 = vmatmul.bf16.vlgmr.msra.gmra.mxu0 %v380_v31 }
 0x210   :  { %v458_v33 = vpop.f32.mrf.mxu0 }
 0x211   :  { %v459_v35 = vadd.f32 %v622_v32, %v458_v33 }
 0x213   :  { %462 = vst [vmem:[#allocation2] sm:$0xff] %v459_v35 }
 0x214   :  { %473 = dma.vmem_to_hbm [thread:$0]  %s469_s12, 128, %s471_s14, [#allocation3]  }
 0x218   :  { %v460_v36 = vpop.f32.mrf.mxu0 }
 0x219   :  { %653 = dma.done.wait [#allocation3], 128  }
 0x21a   :  { %654 = vsyncadd [#allocation3], 4294967168 }
 0x21b   :  { %478 = vsyncpa [#allocation3], 1 }

</bundles_post_ra>
